<compile_context>
chip_gen: v7x
topology: tpu7x:2x2x1
jax: 0.10.0
libtpu: 0.0.40
codegen_flags: <defaults>
</compile_context>

<pallas_src>
import functools

import jax
import jax.numpy as jnp
from jax import lax
from jax.experimental import pallas as pl
from jax.experimental.pallas import tpu as pltpu


def baseline_mlp_kernel(x_ref, w1t_ref, b1_ref, w2t_ref, b2_ref, w3_ref, b3_ref, out_ref):
    # Observations tile (BB, obs_dim) is read as f32 and cast to bf16 on the VPU (free).
    x = x_ref[...].astype(jnp.bfloat16)

    # Layer 1: h1^T = W1^T @ x^T, expressed as a trans_b matmul (contract obs_dim of both
    # operands) so the batch dimension lands on lanes.  f32 accumulation on the MXU.
    h = lax.dot_general(
        w1t_ref[...], x,
        dimension_numbers=(((1,), (1,)), ((), ())),
        preferred_element_type=jnp.float32)                  # (H, BB) f32
    h = jnp.maximum(h + b1_ref[...], 0.0)                    # bias (H,1) lane-broadcast, f32 VPU

    # Layer 2: standard matmul W2^T (H,H) @ h1^T (H,BB); cast activations to bf16 only for
    # the MXU operand, keep accumulation and elementwise math in f32.
    h = lax.dot_general(
        w2t_ref[...], h.astype(jnp.bfloat16),
        dimension_numbers=(((1,), (0,)), ((), ())),
        preferred_element_type=jnp.float32)                  # (H, BB) f32
    h = jnp.maximum(h + b2_ref[...], 0.0)

    # Head Linear(H -> 1): VPU multiply by the w3 column + sublane reduction (XLU slot has
    # slack).  Result (1, BB) is lane-dense, so the store is an unmasked vst.
    out = jnp.sum(h * w3_ref[...], axis=0, keepdims=True) + b3_ref[...]
    out_ref[...] = out.astype(out_ref.dtype)


def _round_up(x, m):
    return ((x + m - 1) // m) * m


def _cdiv(a, b):
    return (a + b - 1) // b


@functools.partial(jax.jit, static_argnames=("block_batch",))
def _baseline_forward_impl(observations, w1t, b1, w2t, b2, w3, b3, *, block_batch):
    B, obs_dim = observations.shape
    H = w1t.shape[0]

    # Tile the batch into few, large blocks (per-grid-step overhead ~0.35us dominates this
    # tiny per-row workload).  Keep the block count even when >1 so the "parallel" axis
    # load-balances across v7x's two TensorCores, and derive BB from that block count so
    # last-tile waste stays bounded (no rounding B up to a full block_batch multiple).
    nblocks = _cdiv(B, block_batch)
    if nblocks > 1 and nblocks % 2 == 1:
        nblocks += 1
    BB = _round_up(_cdiv(B, nblocks), 8)
    nblocks = _cdiv(B, BB)

    out3d = pl.pallas_call(
        baseline_mlp_kernel,
        out_shape=jax.ShapeDtypeStruct((nblocks, 1, BB), jnp.float32),
        grid_spec=pltpu.PrefetchScalarGridSpec(
            num_scalar_prefetch=0,
            grid=(nblocks,),
            in_specs=[
                # f32 observations tile; last (partial) block relies on Pallas edge clamping.
                pl.BlockSpec((BB, obs_dim), lambda i: (i, 0)),
                # Parameters: constant index_maps -> VMEM-resident across grid steps.
                pl.BlockSpec(w1t.shape, lambda i: (0, 0)),
                pl.BlockSpec(b1.shape, lambda i: (0, 0)),
                pl.BlockSpec(w2t.shape, lambda i: (0, 0)),
                pl.BlockSpec(b2.shape, lambda i: (0, 0)),
                pl.BlockSpec(w3.shape, lambda i: (0, 0)),
                pl.BlockSpec(b3.shape, lambda i: (0, 0)),
            ],
            # Lane-dense output row per grid step; leading grid dim squeezed out of the ref.
            out_specs=pl.BlockSpec((None, 1, BB), lambda i: (i, 0, 0)),
        ),
        compiler_params=pltpu.CompilerParams(
            dimension_semantics=("parallel",),      # megacore sharding on v7x
            vmem_limit_bytes=32 * 1024 * 1024,      # explicit; far above actual footprint
        ),
    )(observations, w1t, b1, w2t, b2, w3, b3)

    # PyTorch .squeeze() semantics: [B, 1] -> [B].  Padded tail columns are sliced off.
    return out3d.reshape(-1)[:B]


def prepare_params(params):
    """One-time parameter prep: transpose weights for the batch-on-lanes layout and cast the
    MXU operands to bf16 (hoisted out of the per-call path)."""
    w1, b1, w2, b2, w3, b3 = params
    return (
        jnp.transpose(w1).astype(jnp.bfloat16),        # (H, obs_dim) bf16
        jnp.reshape(b1, (-1, 1)).astype(jnp.float32),  # (H, 1) f32
        jnp.transpose(w2).astype(jnp.bfloat16),        # (H, H) bf16
        jnp.reshape(b2, (-1, 1)).astype(jnp.float32),  # (H, 1) f32
        w3.astype(jnp.float32),                        # (H, 1) f32 (VPU head operand)
        jnp.reshape(b3, (1, 1)).astype(jnp.float32),   # (1, 1) f32
    )


def baseline_forward(observations, prepared_params, *, block_batch=2048):
    """observations: [B, obs_dim] float32 -> returns [B] float32 (squeezed)."""
    return _baseline_forward_impl(observations, *prepared_params, block_batch=block_batch)


def init_params(key, obs_dim, hidden):
    """Deterministic init matching the module's parameter shapes (n_layers=2, layer_size=hidden)."""
    k1, k2, k3, k4, k5, k6 = jax.random.split(key, 6)
    scale1 = 1.0 / jnp.sqrt(obs_dim)
    scale2 = 1.0 / jnp.sqrt(hidden)
    w1 = jax.random.uniform(k1, (obs_dim, hidden), jnp.float32, -scale1, scale1)
    b1 = jax.random.uniform(k2, (1, hidden), jnp.float32, -scale1, scale1)
    w2 = jax.random.uniform(k3, (hidden, hidden), jnp.float32, -scale2, scale2)
    b2 = jax.random.uniform(k4, (1, hidden), jnp.float32, -scale2, scale2)
    w3 = jax.random.uniform(k5, (hidden, 1), jnp.float32, -scale2, scale2)
    b3 = jax.random.uniform(k6, (1, 1), jnp.float32, -scale2, scale2)
    return (w1, b1, w2, b2, w3, b3)


def reference_forward_bf16(observations, params):
    """Reference replicating the kernel's math (bf16 MXU operands, f32 accumulate, f32 head)."""
    w1, b1, w2, b2, w3, b3 = params
    xb = observations.astype(jnp.bfloat16)
    h = jnp.dot(xb, w1.astype(jnp.bfloat16), preferred_element_type=jnp.float32)
    h = jnp.maximum(h + b1, 0.0)
    h = jnp.dot(h.astype(jnp.bfloat16), w2.astype(jnp.bfloat16),
                preferred_element_type=jnp.float32)
    h = jnp.maximum(h + b2, 0.0)
    return jnp.sum(h * jnp.transpose(w3), axis=-1) + b3[0, 0]


def reference_forward_f32(observations, params):
    """Pure f32 reference of the original PyTorch module forward."""
    w1, b1, w2, b2, w3, b3 = params
    h = jnp.maximum(observations @ w1 + b1, 0.0)
    h = jnp.maximum(h @ w2 + b2, 0.0)
    return (h @ w3 + b3)[:, 0]


if __name__ == "__main__":
    key = jax.random.PRNGKey(0)
    k_obs, k_params, k_obs_big = jax.random.split(key, 3)

    batch = 8
    obs_dim = 16      # config['env']['obs_dim']
    layer_size = 32   # config['hyper_params']['layer_size'], n_layers = 2

    observations = jax.random.normal(k_obs, (batch, obs_dim), dtype=jnp.float32)
    params = init_params(k_params, obs_dim, layer_size)
    kparams = prepare_params(params)   # done once, not per forward call

    # Small (demo-sized) batch — single-block path.
    out = jax.block_until_ready(baseline_forward(observations, kparams))
    assert out.ndim == 1 and out.shape == (batch,), out.shape

    ref_bf16 = reference_forward_bf16(observations, params)
    assert jnp.allclose(out, ref_bf16, atol=1e-4, rtol=1e-4), (out, ref_bf16)
    ref_f32 = reference_forward_f32(observations, params)
    assert jnp.allclose(out, ref_f32, atol=5e-2, rtol=5e-2), (out, ref_f32)

    # Larger, non-multiple batch — exercises the cdiv grid (uneven last input block),
    # even 2-block split, lane-dense output, and the parallel axis.
    big_batch = 2050
    obs_big = jax.random.normal(k_obs_big, (big_batch, obs_dim), dtype=jnp.float32)
    out_big = jax.block_until_ready(baseline_forward(obs_big, kparams))
    assert out_big.shape == (big_batch,), out_big.shape
    ref_big = reference_forward_bf16(obs_big, params)
    assert jnp.allclose(out_big, ref_big, atol=1e-4, rtol=1e-4)

    print("KERNEL_OK")
</pallas_src>

<mosaic_0001>
module attributes {stable_mosaic.version = 11 : i64} {
  func.func @baseline_mlp_kernel(%arg0: i32, %arg1: memref<8x16xf32, #tpu.memory_space<vmem>>, %arg2: memref<32x16xbf16, #tpu.memory_space<vmem>>, %arg3: memref<32x1xf32, #tpu.memory_space<vmem>>, %arg4: memref<32x32xbf16, #tpu.memory_space<vmem>>, %arg5: memref<32x1xf32, #tpu.memory_space<vmem>>, %arg6: memref<32x1xf32, #tpu.memory_space<vmem>>, %arg7: memref<1x1xf32, #tpu.memory_space<vmem>>, %arg8: memref<1x1x8xf32, #tpu.memory_space<vmem>>) attributes {dimension_semantics = [#tpu.dimension_semantics<parallel>], iteration_bounds = array<i64: 1>, scalar_prefetch = 0 : i64, scratch_operands = 0 : i64, tpu.core_type = #tpu.core_type<tc>, window_params = [{transform_indices = @transform_0, window_bounds = array<i64: 8, 16>}, {pipeline_mode = #tpu.pipeline_mode<synchronous>, transform_indices = @transform_1, window_bounds = array<i64: 32, 16>}, {pipeline_mode = #tpu.pipeline_mode<synchronous>, transform_indices = @transform_2, window_bounds = array<i64: 32, 1>}, {pipeline_mode = #tpu.pipeline_mode<synchronous>, transform_indices = @transform_3, window_bounds = array<i64: 32, 32>}, {pipeline_mode = #tpu.pipeline_mode<synchronous>, transform_indices = @transform_4, window_bounds = array<i64: 32, 1>}, {pipeline_mode = #tpu.pipeline_mode<synchronous>, transform_indices = @transform_5, window_bounds = array<i64: 32, 1>}, {pipeline_mode = #tpu.pipeline_mode<synchronous>, transform_indices = @transform_6, window_bounds = array<i64: 1, 1>}, {transform_indices = @transform_7, window_bounds = array<i64: 1, 1, 8>}]} {
    %c0 = arith.constant 0 : index
    %c0_0 = arith.constant 0 : index
    %0 = vector.load %arg1[%c0, %c0_0] : memref<8x16xf32, #tpu.memory_space<vmem>>, vector<8x16xf32>
    %1 = arith.truncf %0 : vector<8x16xf32> to vector<8x16xbf16>
    %c0_1 = arith.constant 0 : index
    %c0_2 = arith.constant 0 : index
    %2 = vector.load %arg2[%c0_1, %c0_2] : memref<32x16xbf16, #tpu.memory_space<vmem>>, vector<32x16xbf16>
    %cst = arith.constant dense<0.000000e+00> : vector<32x8xf32>
    %3 = tpu.matmul %2, %1, %cst {dimension_numbers = #tpu.dot_dimension_numbers<[1], [1], [0], [0], [0, 0, 1, 0], [], []>} : vector<32x16xbf16>, vector<8x16xbf16>, vector<32x8xf32> -> vector<32x8xf32>
    %c0_3 = arith.constant 0 : index
    %c0_4 = arith.constant 0 : index
    %4 = vector.load %arg3[%c0_3, %c0_4] : memref<32x1xf32, #tpu.memory_space<vmem>>, vector<32x1xf32>
    %5 = vector.broadcast %4 : vector<32x1xf32> to vector<32x8xf32>
    %6 = arith.addf %3, %5 : vector<32x8xf32>
    %cst_5 = arith.constant 0.000000e+00 : f32
    %7 = vector.broadcast %cst_5 : f32 to vector<32x8xf32>
    %8 = arith.maximumf %6, %7 : vector<32x8xf32>
    %c0_6 = arith.constant 0 : index
    %c0_7 = arith.constant 0 : index
    %9 = vector.load %arg4[%c0_6, %c0_7] : memref<32x32xbf16, #tpu.memory_space<vmem>>, vector<32x32xbf16>
    %10 = arith.truncf %8 : vector<32x8xf32> to vector<32x8xbf16>
    %cst_8 = arith.constant dense<0.000000e+00> : vector<32x8xf32>
    %11 = tpu.matmul %9, %10, %cst_8 {dimension_numbers = #tpu.dot_dimension_numbers<[1], [0], [0], [1], [0, 0, 1, 1], [], []>} : vector<32x32xbf16>, vector<32x8xbf16>, vector<32x8xf32> -> vector<32x8xf32>
    %c0_9 = arith.constant 0 : index
    %c0_10 = arith.constant 0 : index
    %12 = vector.load %arg5[%c0_9, %c0_10] : memref<32x1xf32, #tpu.memory_space<vmem>>, vector<32x1xf32>
    %13 = vector.broadcast %12 : vector<32x1xf32> to vector<32x8xf32>
    %14 = arith.addf %11, %13 : vector<32x8xf32>
    %cst_11 = arith.constant 0.000000e+00 : f32
    %15 = vector.broadcast %cst_11 : f32 to vector<32x8xf32>
    %16 = arith.maximumf %14, %15 : vector<32x8xf32>
    %c0_12 = arith.constant 0 : index
    %c0_13 = arith.constant 0 : index
    %17 = vector.load %arg6[%c0_12, %c0_13] : memref<32x1xf32, #tpu.memory_space<vmem>>, vector<32x1xf32>
    %18 = vector.broadcast %17 : vector<32x1xf32> to vector<32x8xf32>
    %19 = arith.mulf %16, %18 : vector<32x8xf32>
    %cst_14 = arith.constant dense<0.000000e+00> : vector<8xf32>
    %20 = vector.multi_reduction <add>, %19, %cst_14 [0] : vector<32x8xf32> to vector<8xf32>
    %21 = vector.shape_cast %20 : vector<8xf32> to vector<1x8xf32>
    %c0_15 = arith.constant 0 : index
    %c0_16 = arith.constant 0 : index
    %22 = vector.load %arg7[%c0_15, %c0_16] : memref<1x1xf32, #tpu.memory_space<vmem>>, vector<1x1xf32>
    %23 = vector.broadcast %22 : vector<1x1xf32> to vector<1x8xf32>
    %24 = arith.addf %21, %23 : vector<1x8xf32>
    %c0_17 = arith.constant 0 : index
    %c0_18 = arith.constant 0 : index
    %c0_19 = arith.constant 0 : index
    %25 = vector.load %arg8[%c0_17, %c0_18, %c0_19] : memref<1x1x8xf32, #tpu.memory_space<vmem>>, vector<1x1x8xf32>
    %26 = vector.shape_cast %25 : vector<1x1x8xf32> to vector<1x8xf32>
    %27 = vector.shape_cast %24 : vector<1x8xf32> to vector<1x1x8xf32>
    tpu.vector_store %arg8[%c0_17, %c0_18, %c0_19], %27 {strides = array<i32>} : memref<1x1x8xf32, #tpu.memory_space<vmem>>, vector<1x1x8xf32>,
    return
  }
  func.func @transform_0(%arg0: i32) -> (i32, i32) {
    %c0_i32 = arith.constant 0 : i32
    %c0_i32_0 = arith.constant 0 : i32
    return %arg0, %c0_i32 : i32, i32
  }
  func.func @transform_1(%arg0: i32) -> (i32, i32) {
    %c0_i32 = arith.constant 0 : i32
    %c0_i32_0 = arith.constant 0 : i32
    %c0_i32_1 = arith.constant 0 : i32
    return %c0_i32, %c0_i32_0 : i32, i32
  }
  func.func @transform_2(%arg0: i32) -> (i32, i32) {
    %c0_i32 = arith.constant 0 : i32
    %c0_i32_0 = arith.constant 0 : i32
    %c0_i32_1 = arith.constant 0 : i32
    return %c0_i32, %c0_i32_0 : i32, i32
  }
  func.func @transform_3(%arg0: i32) -> (i32, i32) {
    %c0_i32 = arith.constant 0 : i32
    %c0_i32_0 = arith.constant 0 : i32
    %c0_i32_1 = arith.constant 0 : i32
    return %c0_i32, %c0_i32_0 : i32, i32
  }
  func.func @transform_4(%arg0: i32) -> (i32, i32) {
    %c0_i32 = arith.constant 0 : i32
    %c0_i32_0 = arith.constant 0 : i32
    %c0_i32_1 = arith.constant 0 : i32
    return %c0_i32, %c0_i32_0 : i32, i32
  }
  func.func @transform_5(%arg0: i32) -> (i32, i32) {
    %c0_i32 = arith.constant 0 : i32
    %c0_i32_0 = arith.constant 0 : i32
    %c0_i32_1 = arith.constant 0 : i32
    return %c0_i32, %c0_i32_0 : i32, i32
  }
  func.func @transform_6(%arg0: i32) -> (i32, i32) {
    %c0_i32 = arith.constant 0 : i32
    %c0_i32_0 = arith.constant 0 : i32
    %c0_i32_1 = arith.constant 0 : i32
    return %c0_i32, %c0_i32_0 : i32, i32
  }
  func.func @transform_7(%arg0: i32) -> (i32, i32, i32) {
    %c0_i32 = arith.constant 0 : i32
    %c0_i32_0 = arith.constant 0 : i32
    %c0_i32_1 = arith.constant 0 : i32
    return %arg0, %c0_i32, %c0_i32_0 : i32, i32, i32
  }
}

</mosaic_0001>

<bundles_post_ra>
// kernel: _baseline_forward_impl.1
= control target key start
LH: loop header
LB: loop body
LE: loop exit
PB: predicated region body
PF: predicated region fallthrough
CT: control target
= control target key end

     0   :  { %s478_s0 = inlined_call_operand.vmem [shape: f32[8,16], index: 0, kind: input, shape index: {}]   ;;  %s479_s1 = inlined_call_operand.vmem [shape: bf16[32,16], index: 1, kind: input, shape index: {}]   ;;  %s480_s2 = inlined_call_operand.vmem [shape: f32[32,1], index: 2, kind: input, shape index: {}]   ;;  %s481_s3 = inlined_call_operand.vmem [shape: bf16[32,32], index: 3, kind: input, shape index: {}]   ;;  %s482_s4 = inlined_call_operand.vmem [shape: f32[32,1], index: 4, kind: input, shape index: {}]   ;;  %s483_s5 = inlined_call_operand.vmem [shape: f32[32,1], index: 5, kind: input, shape index: {}]   ;;  %s484_s6 = inlined_call_operand.<no memory space> [shape: f32[1,1], index: 6, kind: input, shape index: {}]   ;;  %s485_s7 = inlined_call_operand.hbm [shape: f32[1,1,8], index: 7, kind: output, shape index: {}]  }
   0x1   :  { %v12_v0 = vstv %s484_s6 }
   0x2   :  { %13 = vst [vmem:[#allocation2] sm:$0x1] %v12_v0 }
   0x3   :  { %v30_v1 = vld [vmem:[%s478_s0] sm:$0xff]  ;;  %vm70_vm0 = vcmask 130048   ;;  %v364_v4 = vmov 0   ;;  %v38_v7 = vld [vmem:[%s480_s2 + $0x10] sm:$0xff]  ;;  %v37_v8 = vld [vmem:[%s480_s2 + $0x8] sm:$0xff] }
   0x4   :  { %v31_v2 = vpack.c.bf16 %v30_v1, %v30_v1  ;;  %v336_v3 = vld [vmem:[%s479_s1] sm:$0xff]   ;;  %334 = vset.pattern.permute.xlu0 %v364_v4  ;;  %335 = vset.pattern.permute.xlu1 %v364_v4  ;;  %v337_v9 = vld [vmem:[%s479_s1 + $0x8] sm:$0xff]   ;;  %v39_v10 = vld [vmem:[%s480_s2 + $0x18] sm:$0xff] }
   0x5   :  { %v36_v5 = vld [vmem:[%s480_s2] sm:$0xff]  ;;  %319 = vmatprep.mubr.msk.bf16.mxu0 %vm70_vm0, %v336_v3  ;;  %52 = vperm.xlu1 %335, %v38_v7  }
   0x6   :  { %331 = vmatprep.subr.msk.bf16.mxu0 %vm70_vm0, %v31_v2  ;;  %v78_v6 = vsel %vm70_vm0, %v31_v2, 0  ;;  %42 = vperm.xlu0 %334, %v36_v5  }
   0x7   :  { %318 = vmatpush3.bf16.xpose.msra.mxu0 %v78_v6 }
   0xa   :  { %47 = vperm.xlu0 %334, %v37_v8  }
   0xb   :  { %14 = vsyncpa [#allocation4], 0  ;;  %v139_v11 = vld [vmem:[%s482_s4] sm:$0xff]  ;;  %57 = vperm.xlu1 %335, %v39_v10   ;;  %v140_v12 = vld [vmem:[%s482_s4 + $0x8] sm:$0xff]  ;;  %vm173_vm1 = vcmask 261120   ;;  %vm261_vm2 = vcmask 64512   ;;  %v281_v6 = vlaneseq }
   0xc   :  { %v141_v13 = vld [vmem:[%s482_s4 + $0x10] sm:$0xff]  ;;  %v142_v14 = vld [vmem:[%s482_s4 + $0x18] sm:$0xff]  ;;  %v233_v15 = vld [vmem:[%s483_s5] sm:$0xff]  ;;  %vm286_vm3 = vcmask 57344  }
   0xd   :  { %v234_v16 = vld [vmem:[%s483_s5 + $0x8] sm:$0xff]  ;;  %v235_v17 = vld [vmem:[%s483_s5 + $0x10] sm:$0xff]  ;;  %v236_v18 = vld [vmem:[%s483_s5 + $0x18] sm:$0xff] }
   0xe   :  { %320 = vmatmul.mubr.msk.bf16.vlgmr.msra.gmra.mrb[0].mxu0 %vm70_vm0, %v337_v9  ;;  %145 = vperm.xlu0 %334, %v139_v11   ;;  %v275_v19 = vld [vmem:[#allocation2] sm:$0x1]  ;;  %v339_v39 = vld [vmem:[%s481_s3 + $0x8] sm:$0xff]   ;;  %v282_v9 = vshrl.u32 %v281_v6, 7 }
   0xf   :  { %150 = vperm.xlu1 %335, %v140_v12   ;;  %v338_v20 = vld [vmem:[%s481_s3] sm:$0xff]   ;;  %s365_s3 = smov [#allocation3]  }
  0x10   :  { %327 = vmatprep.mubr.msk.bf16.mxu1 %vm173_vm1, %v338_v20  ;;  %v283_v12 = vsub.s32 0, %v282_v9  ;;  %s294_s8 = sshll.u32 %s365_s3, 4  ;;  %s295_s8 = int_to_ptr.vmem [resolvable:$true] %s294_s8 }
  0x11   :  { %s340_s0 = scalar_lea.vmem %s295_s8, 16  ;;  %s344_s6 = scalar_lea.vmem %s295_s8, 32 }
  0x12   :  { %155 = vperm.xlu0 %334, %v141_v13   ;;  %p341_p0 = scmp.ne.s32.totalorder %s295_s8, %s340_s0  ;;  %p345_p1 = scmp.lt.s32.totalorder %s295_s8, %s295_s8 }
  0x13   :  { %160 = vperm.xlu1 %335, %v142_v14   ;;  %p346_p2 = scmp.lt.s32.totalorder %s344_s6, %s340_s0 }
  0x15   :  { %p347_p3 = por %p346_p2, %p345_p1 }
  0x16   :  { %239 = vperm.xlu0 %334, %v233_v15  }
  0x17   :  { %244 = vperm.xlu1 %335, %v234_v16   ;;  %p348_p4 = pnand %p347_p3, %p341_p0 }
  0x1a   :  { %249 = vperm.xlu0 %334, %v235_v17  }
  0x1b   :  { %254 = vperm.xlu1 %335, %v236_v18  }
  0x1e   :  { %278 = vperm.xlu0 %334, %v275_v19  }
  0x84   :  { %v53_v21 = vpop.permute.xlu1 %52 }
  0x85   :  { %v43_v22 = vpop.permute.xlu0 %42 }
  0x89   :  { %v48_v29 = vpop.permute.xlu0 %47 }
  0x8a   :  { %v58_v26 = vpop.permute.xlu1 %57 }
  0x8d   :  { %v146_v40 = vpop.permute.xlu0 %145 }
  0x8e   :  { %v151_v41 = vpop.permute.xlu1 %150 }
  0x91   :  { %v156_v42 = vpop.permute.xlu0 %155 }
  0x92   :  { %v161_v43 = vpop.permute.xlu1 %160 }
  0x95   :  { %v240_v45 = vpop.permute.xlu0 %239 }
  0x96   :  { %v245_v50 = vpop.permute.xlu1 %244 }
  0x99   :  { %v250_v59 = vpop.permute.xlu0 %249 }
  0x9a   :  { %v255_v62 = vpop.permute.xlu1 %254 }
  0x9d   :  { %v279_v14 = vpop.permute.xlu0 %278 }
  0x9e   :  { %v284_v16 = vrot.slane %v279_v14, %v283_v12 }
  0xe1   :  { %v321_v23 = vpop.f32.mrb[0].mxu0 }
  0xe2   :  { %v123_v24 = vadd.f32 %v321_v23, %v53_v21  ;;  %v114_v25 = vpop.f32.mrb[1].mxu0 }
  0xe3   :  { %v115_v27 = vadd.f32 %v114_v25, %v43_v22  ;;  %v322_v28 = vpop.f32.mrb[2].mxu0 }
  0xe4   :  { %v126_v30 = vadd.f32 %v322_v28, %v58_v26  ;;  %v117_v31 = vpop.f32.mrb[3].mxu0  ;;  %v131_v33 = vmax.f32 %v123_v24, 0.0 }
  0xe5   :  { %v118_v32 = vadd.f32 %v117_v31, %v48_v29  ;;  %v129_v35 = vmax.f32 %v115_v27, 0.0 }
  0xe6   :  { %v132_v34 = vmax.f32 %v126_v30, 0.0 }
  0xe7   :  { %v130_v36 = vmax.f32 %v118_v32, 0.0 }
  0xe8   :  { %v138_v37 = vpack.c.bf16 %v132_v34, %v131_v33 }
  0xe9   :  { %v137_v38 = vpack.c.bf16 %v130_v36, %v129_v35 }
  0xeb   :  { %323 = vmatprep.subr.bf16.mxu1 %v137_v38 }
  0xec   :  { %324 = vmatpush3.bf16.msra.mxu1 %v137_v38 }
  0xed   :  { %325 = vmatprep.subr.bf16.mxu1 %v138_v37 }
  0xf0   :  { %326 = vmatpush3.bf16.msra.mxu1 %v138_v37 }
  0xf3   :  { %328 = vmatmul.mubr.msk.bf16.vlgmr.msra.gmra.mrb[0].mxu1 %vm173_vm1, %v339_v39 }
 0x1c6   :  { %v329_v44 = vpop.f32.mrb[0].mxu1 }
 0x1c7   :  { %v223_v46 = vadd.f32 %v329_v44, %v156_v42  ;;  %v214_v47 = vpop.f32.mrb[1].mxu1 }
 0x1c8   :  { %v215_v48 = vadd.f32 %v214_v47, %v146_v40  ;;  %v330_v49 = vpop.f32.mrb[2].mxu1 }
 0x1c9   :  { %v226_v51 = vadd.f32 %v330_v49, %v161_v43  ;;  %v217_v52 = vpop.f32.mrb[3].mxu1  ;;  %v231_v53 = vmax.f32 %v223_v46, 0.0 }
 0x1ca   :  { %v229_v54 = vmax.f32 %v215_v48, 0.0  ;;  %v218_v55 = vadd.f32 %v217_v52, %v151_v41 }
 0x1cb   :  { %v232_v57 = vmax.f32 %v226_v51, 0.0  ;;  %v259_v60 = vmul.f32 %v250_v59, %v231_v53 }
 0x1cc   :  { %v257_v56 = vmul.f32 %v240_v45, %v229_v54  ;;  %v230_v58 = vmax.f32 %v218_v55, 0.0 }
 0x1cd   :  { %v260_v0 = vmul.f32 %v255_v62, %v232_v57  ;;  %v265_v3 = vsel %vm261_vm2, %v259_v60, 0.0 }
 0x1ce   :  { %v258_v61 = vmul.f32 %v245_v50, %v230_v58  ;;  %v262_v63 = vsel %vm261_vm2, %v257_v56, 0.0 }
 0x1cf   :  { %v267_v5 = vsel %vm261_vm2, %v260_v0, 0.0 }
 0x1d0   :  { %v263_v1 = vsel %vm261_vm2, %v258_v61, 0.0 }
 0x1d1   :  { %v264_v2 = vadd.f32 %v263_v1, %v262_v63 }
 0x1d3   :  { %v266_v4 = vadd.f32 %v265_v3, %v264_v2 }
 0x1d5   :  { %v268_v7 = vadd.f32 %v267_v5, %v266_v4 }
 0x1d7   :  { %v269_v8 = vrot.slane %v268_v7, 4 }
 0x1d9   :  { %v270_v10 = vadd.f32 %v269_v8, %v268_v7 }
 0x1db   :  { %v271_v11 = vrot.slane %v270_v10, 2 }
 0x1dd   :  { %v272_v13 = vadd.f32 %v271_v11, %v270_v10 }
 0x1df   :  { %v273_v15 = vrot.slane %v272_v13, 1 }
 0x1e1   :  { %v274_v17 = vadd.f32 %v273_v15, %v272_v13 }
 0x1e3   :  { %v285_v18 = vadd.f32 %v284_v16, %v274_v17 }
 0x1e5   :  { %287 = vst.msk [vmem:[#allocation3] sm:$0x1] %vm286_vm3, %v285_v18 }
 0x1e6   :  { %351 = shalt.err (!%p348_p4)
}
 0x1e7   :  { %s352_s11 = scalar_lea.hbm %s485_s7, 16 }
 0x1e8   :  { %p353_p5 = scmp.ne.s32.totalorder %s485_s7, %s352_s11  ;;  %p356_p6 = scmp.lt.u32.totalorder %s352_s11, %s485_s7 }
 0x1ea   :  { %p358_p7 = pnand %p356_p6, %p353_p5 }
 0x1ec   :  { %361 = shalt.err (!%p358_p7)
}
 0x1ed   :  { %297 = dma.vmem_to_hbm [thread:$0]  %s295_s8, 16, %s485_s7, [#allocation4]  }
 0x1ee   :  { %362 = dma.done.wait [#allocation4], 16  }
 0x1ef   :  { %363 = vsyncadd [#allocation4], 4294967280 }
 0x1f0   :  { %301 = vsyncpa [#allocation4], 1 }

</bundles_post_ra>
